<compile_context>
chip_gen: v7x
topology: tpu7x:2x2x1
jax: 0.10.0
libtpu: 0.0.40
codegen_flags: <defaults>
</compile_context>

<pallas_src>
import math
import jax
import jax.numpy as jnp
from jax.experimental import pallas as pl
from jax.experimental.pallas import tpu as pltpu

# ---------------- config (small, hidden % heads == 0) ----------------
B = 2          # batch
S = 8          # sequence length
H = 32         # hidden size
NH = 4         # num attention heads
DH = H // NH   # head dim
LN_EPS = 1e-12 # RoBERTa layer_norm_eps


def roberta_attention_kernel(
    x_ref,        # (B*S, H)  all rows, all batches
    wqkv_ref,     # (H, 3H)   [Wq/sqrt(DH) | Wk | Wv]
    bqkv_ref,     # (1, 3H)   [bq/sqrt(DH) | bk | bv]
    wo_ref,       # (H, H)    output dense
    bo_ref,       # (1, H)
    gamma_ref,    # (1, H)    LayerNorm weight
    beta_ref,     # (1, H)    LayerNorm bias
    out_ref,      # (B*S, H)
):
    x = x_ref[...].astype(jnp.float32)                      # (B*S, H)

    # --- fused Q/K/V projection: one MXU matmul ---
    qkv = jnp.dot(x, wqkv_ref[...],
                  preferred_element_type=jnp.float32) + bqkv_ref[...]
    q = qkv[:, 0:H]          # already pre-scaled by 1/sqrt(DH) via the weights
    k = qkv[:, H:2 * H]
    v = qkv[:, 2 * H:3 * H]

    # --- scores for all (batch, head) tiles, gathered into ONE value ---
    # Static 2-D slices; dot_general contracts DH directly (no transpose).
    score_tiles = []
    v_tiles = []
    for b in range(B):
        rows = slice(b * S, (b + 1) * S)
        for h in range(NH):
            cols = slice(h * DH, (h + 1) * DH)
            qh = q[rows, cols]                               # (S, DH)
            kh = k[rows, cols]                               # (S, DH)
            v_tiles.append(v[rows, cols])                    # (S, DH)
            score_tiles.append(
                jax.lax.dot_general(
                    qh, kh, (((1,), (1,)), ((), ())),
                    preferred_element_type=jnp.float32))     # (S, S)
    scores = jnp.concatenate(score_tiles, axis=0)            # (B*NH*S, S) = (64, 8)

    # --- ONE numerically stable softmax pass over all head tiles ---
    m = jnp.max(scores, axis=-1, keepdims=True)
    e = jnp.exp(scores - m)
    denom = jnp.sum(e, axis=-1, keepdims=True)
    probs = e / denom                                        # exact division

    # --- per-head PV dots; contexts stay in registers (no VMEM scratch) ---
    ctx_rows = []
    for b in range(B):
        head_ctx = []
        for h in range(NH):
            i = b * NH + h
            p_bh = probs[i * S:(i + 1) * S, :]               # (S, S)
            head_ctx.append(jnp.dot(p_bh, v_tiles[i],
                                    preferred_element_type=jnp.float32))
        ctx_rows.append(jnp.concatenate(head_ctx, axis=1))   # (S, H)
    ctx = jnp.concatenate(ctx_rows, axis=0)                  # (B*S, H)

    # --- output dense + residual + LayerNorm (one-pass mean/var) ---
    proj = jnp.dot(ctx, wo_ref[...],
                   preferred_element_type=jnp.float32) + bo_ref[...]
    y = proj + x
    mean = jnp.mean(y, axis=-1, keepdims=True)
    mean_sq = jnp.mean(y * y, axis=-1, keepdims=True)
    var = mean_sq - mean * mean
    y_norm = (y - mean) * jax.lax.rsqrt(var + LN_EPS)
    out_ref[...] = (y_norm * gamma_ref[...] + beta_ref[...]).astype(out_ref.dtype)


def roberta_attention(x, params):
    """x: (B, S, H) float32. params: dict of weights (see init_params)."""
    b, s, h = x.shape
    x2 = x.reshape(b * s, h)   # single invocation, all rows at once

    # Advisory cost estimate so XLA schedules this tiny custom call tightly.
    flops = (2 * b * s * h * 3 * h            # fused QKV matmul
             + 2 * b * NH * s * s * DH * 2    # scores + PV
             + 2 * b * s * h * h              # output dense
             + 10 * b * s * h)                # softmax / LN elementwise
    cost = pl.CostEstimate(
        flops=flops,
        transcendentals=b * NH * s * s + b * s,      # exp + rsqrt
        bytes_accessed=4 * (b * s * h * 2 + h * 3 * h + 3 * h
                            + h * h + 3 * h))

    out = pl.pallas_call(
        roberta_attention_kernel,
        out_shape=jax.ShapeDtypeStruct((b * s, h), x.dtype),
        cost_estimate=cost,
    )(x2,
      params['wqkv'], params['bqkv'],
      params['wo'], params['bo'],
      params['gamma'], params['beta'])

    return out.reshape(b, s, h)


def init_params(key):
    """Deterministic synthetic weights. Linear weights stored transposed
    ((in, out)) so the kernel computes y = x @ W + b. The fused QKV weight
    has the 1/sqrt(DH) attention scale folded into the Q part."""
    ks = jax.random.split(key, 8)
    scale = 0.02
    wq = scale * jax.random.normal(ks[0], (H, H), jnp.float32)
    bq = scale * jax.random.normal(ks[1], (1, H), jnp.float32)
    wk = scale * jax.random.normal(ks[2], (H, H), jnp.float32)
    bk = scale * jax.random.normal(ks[3], (1, H), jnp.float32)
    wv = scale * jax.random.normal(ks[4], (H, H), jnp.float32)
    bv = scale * jax.random.normal(ks[5], (1, H), jnp.float32)
    wo = scale * jax.random.normal(ks[6], (H, H), jnp.float32)
    bo = scale * jax.random.normal(ks[7], (1, H), jnp.float32)

    inv_sqrt_dh = 1.0 / math.sqrt(DH)
    p = {
        # fused / pre-scaled weights used by the kernel
        'wqkv': jnp.concatenate([wq * inv_sqrt_dh, wk, wv], axis=1),  # (H, 3H)
        'bqkv': jnp.concatenate([bq * inv_sqrt_dh, bk, bv], axis=1),  # (1, 3H)
        'wo': wo, 'bo': bo,
        'gamma': jnp.ones((1, H), jnp.float32),
        'beta': jnp.zeros((1, H), jnp.float32),
        # original (unfused, unscaled) weights kept for the pure-JAX reference
        'wq': wq, 'bq': bq, 'wk': wk, 'bk': bk, 'wv': wv, 'bv': bv,
    }
    return p


def _reference(x, p):
    """Plain-JAX reference of the same forward for a sanity check."""
    q = x @ p['wq'] + p['bq']
    k = x @ p['wk'] + p['bk']
    v = x @ p['wv'] + p['bv']

    def split(t):  # (B,S,H) -> (B,NH,S,DH)
        return t.reshape(B, S, NH, DH).transpose(0, 2, 1, 3)

    qh, kh, vh = split(q), split(k), split(v)
    scores = jnp.einsum('bhqd,bhkd->bhqk', qh, kh) / math.sqrt(DH)
    probs = jax.nn.softmax(scores, axis=-1)
    ctx = jnp.einsum('bhqk,bhkd->bhqd', probs, vh)
    ctx = ctx.transpose(0, 2, 1, 3).reshape(B, S, H)
    y = ctx @ p['wo'] + p['bo'] + x
    mean = y.mean(-1, keepdims=True)
    var = ((y - mean) ** 2).mean(-1, keepdims=True)
    return (y - mean) / jnp.sqrt(var + LN_EPS) * p['gamma'] + p['beta']


if __name__ == "__main__":
    key = jax.random.PRNGKey(0)
    k_x, k_p = jax.random.split(key)
    x = jax.random.normal(k_x, (B, S, H), jnp.float32)
    params = init_params(k_p)

    out = roberta_attention(x, params)
    out = jax.block_until_ready(out)

    ref = _reference(x, params)
    assert out.shape == (B, S, H)
    # Exact softmax division now; remaining diffs are f32 reassociation only.
    assert jnp.allclose(out, ref, atol=2e-4, rtol=2e-4), "mismatch vs reference"

    print("KERNEL_OK")
</pallas_src>

<mosaic_0001>
module attributes {stable_mosaic.version = 11 : i64} {
  func.func @roberta_attention_kernel(%arg0: memref<16x32xf32, #tpu.memory_space<vmem>>, %arg1: memref<32x96xf32, #tpu.memory_space<vmem>>, %arg2: memref<1x96xf32, #tpu.memory_space<vmem>>, %arg3: memref<32x32xf32, #tpu.memory_space<vmem>>, %arg4: memref<1x32xf32, #tpu.memory_space<vmem>>, %arg5: memref<1x32xf32, #tpu.memory_space<vmem>>, %arg6: memref<1x32xf32, #tpu.memory_space<vmem>>, %arg7: memref<16x32xf32, #tpu.memory_space<vmem>>) attributes {dimension_semantics = [], scalar_prefetch = 0 : i64, scratch_operands = 0 : i64, tpu.core_type = #tpu.core_type<tc>} {
    %c0 = arith.constant 0 : index
    %c0_0 = arith.constant 0 : index
    %0 = vector.load %arg0[%c0, %c0_0] : memref<16x32xf32, #tpu.memory_space<vmem>>, vector<16x32xf32>
    %c0_1 = arith.constant 0 : index
    %c0_2 = arith.constant 0 : index
    %1 = vector.load %arg1[%c0_1, %c0_2] : memref<32x96xf32, #tpu.memory_space<vmem>>, vector<32x96xf32>
    %cst = arith.constant dense<0.000000e+00> : vector<16x96xf32>
    %2 = tpu.matmul %0, %1, %cst {dimension_numbers = #tpu.dot_dimension_numbers<[1], [0], [0], [1], [0, 0, 1, 1], [], []>} : vector<16x32xf32>, vector<32x96xf32>, vector<16x96xf32> -> vector<16x96xf32>
    %c0_3 = arith.constant 0 : index
    %c0_4 = arith.constant 0 : index
    %3 = vector.load %arg2[%c0_3, %c0_4] : memref<1x96xf32, #tpu.memory_space<vmem>>, vector<1x96xf32>
    %4 = vector.broadcast %3 : vector<1x96xf32> to vector<16x96xf32>
    %5 = arith.addf %2, %4 : vector<16x96xf32>
    %6 = vector.extract_strided_slice %5 {offsets = [0, 0], sizes = [16, 32], strides = [1, 1]} : vector<16x96xf32> to vector<16x32xf32>
    %7 = vector.extract_strided_slice %5 {offsets = [0, 32], sizes = [16, 32], strides = [1, 1]} : vector<16x96xf32> to vector<16x32xf32>
    %8 = vector.extract_strided_slice %5 {offsets = [0, 64], sizes = [16, 32], strides = [1, 1]} : vector<16x96xf32> to vector<16x32xf32>
    %9 = vector.extract_strided_slice %6 {offsets = [0, 0], sizes = [8, 8], strides = [1, 1]} : vector<16x32xf32> to vector<8x8xf32>
    %10 = vector.extract_strided_slice %7 {offsets = [0, 0], sizes = [8, 8], strides = [1, 1]} : vector<16x32xf32> to vector<8x8xf32>
    %11 = vector.extract_strided_slice %8 {offsets = [0, 0], sizes = [8, 8], strides = [1, 1]} : vector<16x32xf32> to vector<8x8xf32>
    %cst_5 = arith.constant dense<0.000000e+00> : vector<8x8xf32>
    %12 = tpu.matmul %9, %10, %cst_5 {dimension_numbers = #tpu.dot_dimension_numbers<[1], [1], [0], [0], [0, 0, 1, 0], [], []>} : vector<8x8xf32>, vector<8x8xf32>, vector<8x8xf32> -> vector<8x8xf32>
    %13 = vector.extract_strided_slice %6 {offsets = [0, 8], sizes = [8, 8], strides = [1, 1]} : vector<16x32xf32> to vector<8x8xf32>
    %14 = vector.extract_strided_slice %7 {offsets = [0, 8], sizes = [8, 8], strides = [1, 1]} : vector<16x32xf32> to vector<8x8xf32>
    %15 = vector.extract_strided_slice %8 {offsets = [0, 8], sizes = [8, 8], strides = [1, 1]} : vector<16x32xf32> to vector<8x8xf32>
    %cst_6 = arith.constant dense<0.000000e+00> : vector<8x8xf32>
    %16 = tpu.matmul %13, %14, %cst_6 {dimension_numbers = #tpu.dot_dimension_numbers<[1], [1], [0], [0], [0, 0, 1, 0], [], []>} : vector<8x8xf32>, vector<8x8xf32>, vector<8x8xf32> -> vector<8x8xf32>
    %17 = vector.extract_strided_slice %6 {offsets = [0, 16], sizes = [8, 8], strides = [1, 1]} : vector<16x32xf32> to vector<8x8xf32>
    %18 = vector.extract_strided_slice %7 {offsets = [0, 16], sizes = [8, 8], strides = [1, 1]} : vector<16x32xf32> to vector<8x8xf32>
    %19 = vector.extract_strided_slice %8 {offsets = [0, 16], sizes = [8, 8], strides = [1, 1]} : vector<16x32xf32> to vector<8x8xf32>
    %cst_7 = arith.constant dense<0.000000e+00> : vector<8x8xf32>
    %20 = tpu.matmul %17, %18, %cst_7 {dimension_numbers = #tpu.dot_dimension_numbers<[1], [1], [0], [0], [0, 0, 1, 0], [], []>} : vector<8x8xf32>, vector<8x8xf32>, vector<8x8xf32> -> vector<8x8xf32>
    %21 = vector.extract_strided_slice %6 {offsets = [0, 24], sizes = [8, 8], strides = [1, 1]} : vector<16x32xf32> to vector<8x8xf32>
    %22 = vector.extract_strided_slice %7 {offsets = [0, 24], sizes = [8, 8], strides = [1, 1]} : vector<16x32xf32> to vector<8x8xf32>
    %23 = vector.extract_strided_slice %8 {offsets = [0, 24], sizes = [8, 8], strides = [1, 1]} : vector<16x32xf32> to vector<8x8xf32>
    %cst_8 = arith.constant dense<0.000000e+00> : vector<8x8xf32>
    %24 = tpu.matmul %21, %22, %cst_8 {dimension_numbers = #tpu.dot_dimension_numbers<[1], [1], [0], [0], [0, 0, 1, 0], [], []>} : vector<8x8xf32>, vector<8x8xf32>, vector<8x8xf32> -> vector<8x8xf32>
    %25 = vector.extract_strided_slice %6 {offsets = [8, 0], sizes = [8, 8], strides = [1, 1]} : vector<16x32xf32> to vector<8x8xf32>
    %26 = vector.extract_strided_slice %7 {offsets = [8, 0], sizes = [8, 8], strides = [1, 1]} : vector<16x32xf32> to vector<8x8xf32>
    %27 = vector.extract_strided_slice %8 {offsets = [8, 0], sizes = [8, 8], strides = [1, 1]} : vector<16x32xf32> to vector<8x8xf32>
    %cst_9 = arith.constant dense<0.000000e+00> : vector<8x8xf32>
    %28 = tpu.matmul %25, %26, %cst_9 {dimension_numbers = #tpu.dot_dimension_numbers<[1], [1], [0], [0], [0, 0, 1, 0], [], []>} : vector<8x8xf32>, vector<8x8xf32>, vector<8x8xf32> -> vector<8x8xf32>
    %29 = vector.extract_strided_slice %6 {offsets = [8, 8], sizes = [8, 8], strides = [1, 1]} : vector<16x32xf32> to vector<8x8xf32>
    %30 = vector.extract_strided_slice %7 {offsets = [8, 8], sizes = [8, 8], strides = [1, 1]} : vector<16x32xf32> to vector<8x8xf32>
    %31 = vector.extract_strided_slice %8 {offsets = [8, 8], sizes = [8, 8], strides = [1, 1]} : vector<16x32xf32> to vector<8x8xf32>
    %cst_10 = arith.constant dense<0.000000e+00> : vector<8x8xf32>
    %32 = tpu.matmul %29, %30, %cst_10 {dimension_numbers = #tpu.dot_dimension_numbers<[1], [1], [0], [0], [0, 0, 1, 0], [], []>} : vector<8x8xf32>, vector<8x8xf32>, vector<8x8xf32> -> vector<8x8xf32>
    %33 = vector.extract_strided_slice %6 {offsets = [8, 16], sizes = [8, 8], strides = [1, 1]} : vector<16x32xf32> to vector<8x8xf32>
    %34 = vector.extract_strided_slice %7 {offsets = [8, 16], sizes = [8, 8], strides = [1, 1]} : vector<16x32xf32> to vector<8x8xf32>
    %35 = vector.extract_strided_slice %8 {offsets = [8, 16], sizes = [8, 8], strides = [1, 1]} : vector<16x32xf32> to vector<8x8xf32>
    %cst_11 = arith.constant dense<0.000000e+00> : vector<8x8xf32>
    %36 = tpu.matmul %33, %34, %cst_11 {dimension_numbers = #tpu.dot_dimension_numbers<[1], [1], [0], [0], [0, 0, 1, 0], [], []>} : vector<8x8xf32>, vector<8x8xf32>, vector<8x8xf32> -> vector<8x8xf32>
    %37 = vector.extract_strided_slice %6 {offsets = [8, 24], sizes = [8, 8], strides = [1, 1]} : vector<16x32xf32> to vector<8x8xf32>
    %38 = vector.extract_strided_slice %7 {offsets = [8, 24], sizes = [8, 8], strides = [1, 1]} : vector<16x32xf32> to vector<8x8xf32>
    %39 = vector.extract_strided_slice %8 {offsets = [8, 24], sizes = [8, 8], strides = [1, 1]} : vector<16x32xf32> to vector<8x8xf32>
    %cst_12 = arith.constant dense<0.000000e+00> : vector<8x8xf32>
    %40 = tpu.matmul %37, %38, %cst_12 {dimension_numbers = #tpu.dot_dimension_numbers<[1], [1], [0], [0], [0, 0, 1, 0], [], []>} : vector<8x8xf32>, vector<8x8xf32>, vector<8x8xf32> -> vector<8x8xf32>
    %41 = tpu.concatenate %12, %16, %20, %24, %28, %32, %36, %40 in 0 : vector<8x8xf32>, vector<8x8xf32>, vector<8x8xf32>, vector<8x8xf32>, vector<8x8xf32>, vector<8x8xf32>, vector<8x8xf32>, vector<8x8xf32> -> vector<64x8xf32>
    %cst_13 = arith.constant dense<0xFF800000> : vector<64xf32>
    %42 = vector.multi_reduction <maximumf>, %41, %cst_13 [1] : vector<64x8xf32> to vector<64xf32>
    %43 = vector.shape_cast %42 : vector<64xf32> to vector<64x1xf32>
    %44 = vector.broadcast %43 : vector<64x1xf32> to vector<64x8xf32>
    %45 = arith.subf %41, %44 : vector<64x8xf32>
    %46 = math.exp %45 : vector<64x8xf32>
    %cst_14 = arith.constant dense<0.000000e+00> : vector<64xf32>
    %47 = vector.multi_reduction <add>, %46, %cst_14 [1] : vector<64x8xf32> to vector<64xf32>
    %48 = vector.shape_cast %47 : vector<64xf32> to vector<64x1xf32>
    %49 = vector.broadcast %48 : vector<64x1xf32> to vector<64x8xf32>
    %50 = arith.divf %46, %49 : vector<64x8xf32>
    %51 = vector.extract_strided_slice %50 {offsets = [0, 0], sizes = [8, 8], strides = [1, 1]} : vector<64x8xf32> to vector<8x8xf32>
    %cst_15 = arith.constant dense<0.000000e+00> : vector<8x8xf32>
    %52 = tpu.matmul %51, %11, %cst_15 {dimension_numbers = #tpu.dot_dimension_numbers<[1], [0], [0], [1], [0, 0, 1, 1], [], []>} : vector<8x8xf32>, vector<8x8xf32>, vector<8x8xf32> -> vector<8x8xf32>
    %53 = vector.extract_strided_slice %50 {offsets = [8, 0], sizes = [8, 8], strides = [1, 1]} : vector<64x8xf32> to vector<8x8xf32>
    %cst_16 = arith.constant dense<0.000000e+00> : vector<8x8xf32>
    %54 = tpu.matmul %53, %15, %cst_16 {dimension_numbers = #tpu.dot_dimension_numbers<[1], [0], [0], [1], [0, 0, 1, 1], [], []>} : vector<8x8xf32>, vector<8x8xf32>, vector<8x8xf32> -> vector<8x8xf32>
    %55 = vector.extract_strided_slice %50 {offsets = [16, 0], sizes = [8, 8], strides = [1, 1]} : vector<64x8xf32> to vector<8x8xf32>
    %cst_17 = arith.constant dense<0.000000e+00> : vector<8x8xf32>
    %56 = tpu.matmul %55, %19, %cst_17 {dimension_numbers = #tpu.dot_dimension_numbers<[1], [0], [0], [1], [0, 0, 1, 1], [], []>} : vector<8x8xf32>, vector<8x8xf32>, vector<8x8xf32> -> vector<8x8xf32>
    %57 = vector.extract_strided_slice %50 {offsets = [24, 0], sizes = [8, 8], strides = [1, 1]} : vector<64x8xf32> to vector<8x8xf32>
    %cst_18 = arith.constant dense<0.000000e+00> : vector<8x8xf32>
    %58 = tpu.matmul %57, %23, %cst_18 {dimension_numbers = #tpu.dot_dimension_numbers<[1], [0], [0], [1], [0, 0, 1, 1], [], []>} : vector<8x8xf32>, vector<8x8xf32>, vector<8x8xf32> -> vector<8x8xf32>
    %59 = tpu.concatenate %52, %54, %56, %58 in 1 : vector<8x8xf32>, vector<8x8xf32>, vector<8x8xf32>, vector<8x8xf32> -> vector<8x32xf32>
    %60 = vector.extract_strided_slice %50 {offsets = [32, 0], sizes = [8, 8], strides = [1, 1]} : vector<64x8xf32> to vector<8x8xf32>
    %cst_19 = arith.constant dense<0.000000e+00> : vector<8x8xf32>
    %61 = tpu.matmul %60, %27, %cst_19 {dimension_numbers = #tpu.dot_dimension_numbers<[1], [0], [0], [1], [0, 0, 1, 1], [], []>} : vector<8x8xf32>, vector<8x8xf32>, vector<8x8xf32> -> vector<8x8xf32>
    %62 = vector.extract_strided_slice %50 {offsets = [40, 0], sizes = [8, 8], strides = [1, 1]} : vector<64x8xf32> to vector<8x8xf32>
    %cst_20 = arith.constant dense<0.000000e+00> : vector<8x8xf32>
    %63 = tpu.matmul %62, %31, %cst_20 {dimension_numbers = #tpu.dot_dimension_numbers<[1], [0], [0], [1], [0, 0, 1, 1], [], []>} : vector<8x8xf32>, vector<8x8xf32>, vector<8x8xf32> -> vector<8x8xf32>
    %64 = vector.extract_strided_slice %50 {offsets = [48, 0], sizes = [8, 8], strides = [1, 1]} : vector<64x8xf32> to vector<8x8xf32>
    %cst_21 = arith.constant dense<0.000000e+00> : vector<8x8xf32>
    %65 = tpu.matmul %64, %35, %cst_21 {dimension_numbers = #tpu.dot_dimension_numbers<[1], [0], [0], [1], [0, 0, 1, 1], [], []>} : vector<8x8xf32>, vector<8x8xf32>, vector<8x8xf32> -> vector<8x8xf32>
    %66 = vector.extract_strided_slice %50 {offsets = [56, 0], sizes = [8, 8], strides = [1, 1]} : vector<64x8xf32> to vector<8x8xf32>
    %cst_22 = arith.constant dense<0.000000e+00> : vector<8x8xf32>
    %67 = tpu.matmul %66, %39, %cst_22 {dimension_numbers = #tpu.dot_dimension_numbers<[1], [0], [0], [1], [0, 0, 1, 1], [], []>} : vector<8x8xf32>, vector<8x8xf32>, vector<8x8xf32> -> vector<8x8xf32>
    %68 = tpu.concatenate %61, %63, %65, %67 in 1 : vector<8x8xf32>, vector<8x8xf32>, vector<8x8xf32>, vector<8x8xf32> -> vector<8x32xf32>
    %69 = tpu.concatenate %59, %68 in 0 : vector<8x32xf32>, vector<8x32xf32> -> vector<16x32xf32>
    %c0_23 = arith.constant 0 : index
    %c0_24 = arith.constant 0 : index
    %70 = vector.load %arg3[%c0_23, %c0_24] : memref<32x32xf32, #tpu.memory_space<vmem>>, vector<32x32xf32>
    %cst_25 = arith.constant dense<0.000000e+00> : vector<16x32xf32>
    %71 = tpu.matmul %69, %70, %cst_25 {dimension_numbers = #tpu.dot_dimension_numbers<[1], [0], [0], [1], [0, 0, 1, 1], [], []>} : vector<16x32xf32>, vector<32x32xf32>, vector<16x32xf32> -> vector<16x32xf32>
    %c0_26 = arith.constant 0 : index
    %c0_27 = arith.constant 0 : index
    %72 = vector.load %arg4[%c0_26, %c0_27] : memref<1x32xf32, #tpu.memory_space<vmem>>, vector<1x32xf32>
    %73 = vector.broadcast %72 : vector<1x32xf32> to vector<16x32xf32>
    %74 = arith.addf %71, %73 : vector<16x32xf32>
    %75 = arith.addf %74, %0 : vector<16x32xf32>
    %cst_28 = arith.constant dense<0.000000e+00> : vector<16xf32>
    %76 = vector.multi_reduction <add>, %75, %cst_28 [1] : vector<16x32xf32> to vector<16xf32>
    %77 = vector.shape_cast %76 : vector<16xf32> to vector<16x1xf32>
    %cst_29 = arith.constant 3.200000e+01 : f32
    %78 = vector.broadcast %cst_29 : f32 to vector<16x1xf32>
    %79 = arith.divf %77, %78 : vector<16x1xf32>
    %80 = arith.mulf %75, %75 : vector<16x32xf32>
    %cst_30 = arith.constant dense<0.000000e+00> : vector<16xf32>
    %81 = vector.multi_reduction <add>, %80, %cst_30 [1] : vector<16x32xf32> to vector<16xf32>
    %82 = vector.shape_cast %81 : vector<16xf32> to vector<16x1xf32>
    %cst_31 = arith.constant 3.200000e+01 : f32
    %83 = vector.broadcast %cst_31 : f32 to vector<16x1xf32>
    %84 = arith.divf %82, %83 : vector<16x1xf32>
    %85 = arith.mulf %79, %79 : vector<16x1xf32>
    %86 = arith.subf %84, %85 : vector<16x1xf32>
    %87 = vector.broadcast %79 : vector<16x1xf32> to vector<16x32xf32>
    %88 = arith.subf %75, %87 : vector<16x32xf32>
    %cst_32 = arith.constant 9.99999996E-13 : f32
    %89 = vector.broadcast %cst_32 : f32 to vector<16x1xf32>
    %90 = arith.addf %86, %89 : vector<16x1xf32>
    %91 = math.rsqrt %90 : vector<16x1xf32>
    %92 = vector.broadcast %91 : vector<16x1xf32> to vector<16x32xf32>
    %93 = arith.mulf %88, %92 : vector<16x32xf32>
    %c0_33 = arith.constant 0 : index
    %c0_34 = arith.constant 0 : index
    %94 = vector.load %arg5[%c0_33, %c0_34] : memref<1x32xf32, #tpu.memory_space<vmem>>, vector<1x32xf32>
    %95 = vector.broadcast %94 : vector<1x32xf32> to vector<16x32xf32>
    %96 = arith.mulf %93, %95 : vector<16x32xf32>
    %c0_35 = arith.constant 0 : index
    %c0_36 = arith.constant 0 : index
    %97 = vector.load %arg6[%c0_35, %c0_36] : memref<1x32xf32, #tpu.memory_space<vmem>>, vector<1x32xf32>
    %98 = vector.broadcast %97 : vector<1x32xf32> to vector<16x32xf32>
    %99 = arith.addf %96, %98 : vector<16x32xf32>
    %c0_37 = arith.constant 0 : index
    %c0_38 = arith.constant 0 : index
    %100 = vector.load %arg7[%c0_37, %c0_38] : memref<16x32xf32, #tpu.memory_space<vmem>>, vector<16x32xf32>
    tpu.vector_store %arg7[%c0_37, %c0_38], %99 {strides = array<i32>} : memref<16x32xf32, #tpu.memory_space<vmem>>, vector<16x32xf32>,
    return
  }
}

</mosaic_0001>

<bundles_post_ra>
// kernel: tpu_custom_call.1
= control target key start
LH: loop header
LB: loop body
LE: loop exit
PB: predicated region body
PF: predicated region fallthrough
CT: control target
= control target key end

     0   :  { %12 = vsyncpa [#allocation3], 0  ;;  %s2312_s0 = inlined_call_operand.hbm [shape: f32[16,32], index: 0, kind: input, shape index: {}]   ;;  %s2313_s1 = inlined_call_operand.hbm [shape: f32[32,96], index: 1, kind: input, shape index: {}]   ;;  %s2314_s2 = inlined_call_operand.vmem [shape: f32[1,96], index: 2, kind: input, shape index: {}]   ;;  %s2315_s3 = inlined_call_operand.hbm [shape: f32[32,32], index: 3, kind: input, shape index: {}]   ;;  %s2316_s4 = inlined_call_operand.vmem [shape: f32[1,32], index: 4, kind: input, shape index: {}]   ;;  %s2317_s5 = inlined_call_operand.vmem [shape: f32[1,32], index: 5, kind: input, shape index: {}]   ;;  %s2318_s6 = inlined_call_operand.vmem [shape: f32[1,32], index: 6, kind: input, shape index: {}]   ;;  %s2319_s7 = inlined_call_operand.hbm [shape: f32[16,32], index: 7, kind: output, shape index: {}]  }
   0x1   :  { %13 = vsyncpa [#allocation6], 0 }
   0x2   :  { %14 = vsyncpa [#allocation4], 0  ;;  %s2022_s24 = smov [#allocation5]   ;;  %s2023_s26 = smov [#allocation2]  }
   0x3   :  { %s32_s25 = sshll.u32 %s2022_s24, 4  ;;  %s20_s27 = sshll.u32 %s2023_s26, 4  ;;  %s33_s25 = int_to_ptr.vmem [resolvable:$true] %s32_s25  ;;  %s2083_s27 = int_to_ptr.vmem [resolvable:$true] %s20_s27 }
   0x4   :  { %s1928_s30 = scalar_lea.hbm %s2313_s1, 512 }
   0x5   :  { %p1929_p0 = scmp.ne.s32.totalorder %s2313_s1, %s1928_s30  ;;  %p1932_p1 = scmp.lt.u32.totalorder %s1928_s30, %s2313_s1 }
   0x7   :  { %p1934_p2 = pnand %p1932_p1, %p1929_p0 }
   0x9   :  { %1937 = shalt.err (!%p1934_p2)
}
   0xa   :  { %s1938_s12 = scalar_lea.vmem %s33_s25, 512  ;;  %p1943_p4 = scmp.lt.s32.totalorder %s33_s25, %s33_s25 }
   0xb   :  { %p1939_p3 = scmp.ne.s32.totalorder %s33_s25, %s1938_s12  ;;  %p1944_p5 = scmp.lt.s32.totalorder %s1938_s12, %s1938_s12 }
   0xd   :  { %p1945_p6 = por %p1944_p5, %p1943_p4 }
   0xf   :  { %p1946_p7 = pnand %p1945_p6, %p1939_p3 }
  0x11   :  { %1949 = shalt.err (!%p1946_p7)
}
  0x12   :  { %s2024_s13 = smov 128   ;;  %s2025_s14 = smov 8  }
  0x13   :  { %38 = dma.hbm_to_vmem [thread:$0]  %s2313_s1, 512, %s33_s25, [#allocation6], %s2024_s13, %s2024_s13, %s2025_s14  }
  0x14   :  { %s1950_s19 = scalar_lea.hbm %s2312_s0, 256 }
  0x15   :  { %p1951_p8 = scmp.ne.s32.totalorder %s2312_s0, %s1950_s19  ;;  %p1954_p9 = scmp.lt.u32.totalorder %s1950_s19, %s2312_s0 }
  0x17   :  { %p1956_p10 = pnand %p1954_p9, %p1951_p8 }
  0x19   :  { %1959 = shalt.err (!%p1956_p10)
}
  0x1a   :  { %s1960_s24 = scalar_lea.vmem %s2083_s27, 256  ;;  %p1965_p12 = scmp.lt.s32.totalorder %s2083_s27, %s2083_s27 }
  0x1b   :  { %p1961_p11 = scmp.ne.s32.totalorder %s2083_s27, %s1960_s24  ;;  %p1966_p13 = scmp.lt.s32.totalorder %s1960_s24, %s1960_s24 }
  0x1d   :  { %p1967_p0 = por %p1966_p13, %p1965_p12 }
  0x1f   :  { %p1968_p1 = pnand %p1967_p0, %p1961_p11 }
  0x21   :  { %1971 = shalt.err (!%p1968_p1)
}
  0x22   :  { %26 = dma.hbm_to_vmem [thread:$0]  %s2312_s0, 256, %s2083_s27, [#allocation3], %s2024_s13, %s2024_s13, %s2025_s14  }
  0x23   :  { %s2026_s26 = smov [#allocation7]   ;;  %s1972_s8 = scalar_lea.hbm %s2315_s3, 512 }
  0x24   :  { %s46_s28 = sshll.u32 %s2026_s26, 4  ;;  %p1973_p2 = scmp.ne.s32.totalorder %s2315_s3, %s1972_s8  ;;  %s47_s28 = int_to_ptr.vmem [resolvable:$true] %s46_s28 }
  0x25   :  { %p1976_p3 = scmp.lt.u32.totalorder %s1972_s8, %s2315_s3 }
  0x27   :  { %p1978_p4 = pnand %p1976_p3, %p1973_p2 }
  0x29   :  { %1981 = shalt.err (!%p1978_p4)
}
  0x2a   :  { %s1982_s15 = scalar_lea.vmem %s47_s28, 512  ;;  %p1987_p6 = scmp.lt.s32.totalorder %s47_s28, %s47_s28 }
  0x2b   :  { %p1983_p5 = scmp.ne.s32.totalorder %s47_s28, %s1982_s15  ;;  %p1988_p7 = scmp.lt.s32.totalorder %s1982_s15, %s1982_s15 }
  0x2d   :  { %p1989_p8 = por %p1988_p7, %p1987_p6 }
  0x2f   :  { %p1990_p9 = pnand %p1989_p8, %p1983_p5 }
  0x31   :  { %1993 = shalt.err (!%p1990_p9)
}
  0x32   :  { %52 = dma.hbm_to_vmem [thread:$0]  %s2315_s3, 512, %s47_s28, [#allocation6], %s2024_s13, %s2024_s13, %s2025_s14  }
  0x33   :  { %2016 = dma.done.wait [#allocation3], 256  }
  0x34   :  { %2017 = vsyncadd [#allocation3], 4294967040 }
  0x35   :  { %2018 = dma.done.wait [#allocation6], 1024  }
  0x36   :  { %2019 = vsyncadd [#allocation6], 4294966272  ;;  %vm81_vm0 = vcmask 261120   ;;  %v70_v0 = vld [vmem:[#allocation5] sm:$0xff]  ;;  %v71_v1 = vld [vmem:[#allocation5 + $0x8] sm:$0xff]  ;;  %v2027_v8 = vmov 0.0  }
  0x37   :  { %v72_v2 = vld [vmem:[#allocation5 + $0x10] sm:$0xff]  ;;  %v1855_v3 = vpack.c.bf16 %v71_v1, %v70_v0  ;;  %v73_v4 = vld [vmem:[#allocation5 + $0x18] sm:$0xff]  ;;  %1764 = vmatprep.subr.mxu1 %v2027_v8  ;;  %vm2028_vm1 = vmmov 0   ;;  %s2029_s17 = smov 96   ;;  %s2030_s18 = smov 120   ;;  %vm166_vm2 = vcmask 64512  }
  0x38   :  { %v2135_v5 = vld [vmem:[#allocation2] sm:$0xff]  ;;  %v1859_v6 = vpack.c.bf16 %v73_v4, %v72_v2  ;;  %v2139_v7 = vld [vmem:[#allocation2 + $0x8] sm:$0xff]  ;;  %1766 = vmatprep.mubr.msk.f32.mxu1 %vm2028_vm1, %v2027_v8  ;;  %s2031_s19 = smov 88   ;;  %s2032_s20 = smov 80   ;;  %vm1191_vm3 = vcmask 130048   ;;  %vm1193_vm4 = vcmask 195584  }
  0x39   :  { %1761 = vmatprep.mubr.msk.f32.mxu0 %vm81_vm0, %v2135_v5  ;;  %1856 = vmatprep.subr.bf16.mxu0 %v1855_v3  ;;  %v1677_v9 = vld [vmem:[%s2314_s2] ss:$0 sm:$0xff]  ;;  %s2033_s2 = smov 72   ;;  %s2034_s21 = smov 112  }
  0x3a   :  { %1858 = vmatpush3.bf16.msra.mxu0 %v1855_v3  ;;  %s2035_s22 = smov 104   ;;  %s2036_s23 = smov 64  }
  0x3b   :  { %1860 = vmatprep.subr.bf16.mxu0 %v1859_v6  ;;  %s2037_s24 = smov 48   ;;  %s2038_s1 = smov 56  }
  0x3c   :  { %s2039_s25 = smov 40   ;;  %s2040_s26 = smov 16  }
  0x3d   :  { %s2041_s28 = smov 24   ;;  %s2042_s11 = smov [#allocation8]  }
  0x3e   :  { %1862 = vmatpush3.bf16.msra.mxu0 %v1859_v6  ;;  %s1664_s12 = sshll.u32 %s2042_s11, 4  ;;  %s1665_s12 = int_to_ptr.vmem [resolvable:$true] %s1664_s12 }
  0x3f   :  { %1784 = vmatprep.subr.mxu0 %v2027_v8  ;;  %p1999_p11 = scmp.lt.s32.totalorder %s1665_s12, %s1665_s12 }
  0x41   :  { %1762 = vmatmul.mubr.msk.f32.vlgmr.msra.gmra.mrb[0].mxu0 %vm81_vm0, %v2139_v7 }
  0x42   :  { %1786 = vmatprep.mubr.msk.f32.mxu0 %vm2028_vm1, %v2027_v8 }
 0x114   :  { %v1763_v10 = vpop.f32.mrb[0].mxu0 }
 0x115   :  { %v2152_v11 = vadd.f32 %v1763_v10, %v1677_v9  ;;  %v154_v12 = vpop.f32.mrb[1].mxu0 }
 0x116   :  { %v2154_v13 = vadd.f32 %v1677_v9, %v154_v12 }
 0x117   :  { %476 = vrot.lane.b32.xlu1 %v2152_v11, %s2029_s17 }
 0x118   :  { %164 = vrot.lane.b32.xlu0 %v2154_v13, %s2029_s17 }
 0x11b   :  { %241 = vrot.lane.b32.xlu1 %v2154_v13, %s2030_s18 }
 0x11c   :  { %243 = vrot.lane.b32.xlu0 %v2154_v13, %s2031_s19 }
 0x11f   :  { %321 = vrot.lane.b32.xlu1 %v2154_v13, %s2032_s20 }
 0x120   :  { %554 = vrot.lane.b32.xlu0 %v2152_v11, %s2031_s19 }
 0x123   :  { %399 = vrot.lane.b32.xlu1 %v2154_v13, %s2033_s2 }
 0x124   :  { %319 = vrot.lane.b32.xlu0 %v2154_v13, %s2034_s21 }
 0x127   :  { %552 = vrot.lane.b32.xlu1 %v2152_v11, %s2030_s18 }
 0x128   :  { %397 = vrot.lane.b32.xlu0 %v2154_v13, %s2035_s22 }
 0x12b   :  { %710 = vrot.lane.b32.xlu1 %v2152_v11, %s2033_s2 }
 0x12c   :  { %632 = vrot.lane.b32.xlu0 %v2152_v11, %s2032_s20 }
 0x12f   :  { %708 = vrot.lane.b32.xlu1 %v2152_v11, %s2035_s22 }
 0x130   :  { %630 = vrot.lane.b32.xlu0 %v2152_v11, %s2034_s21 }
 0x189   :  { %v477_v14 = vpop.permute.xlu1 %476 }
 0x18a   :  { %1785 = vmatpush3.xpose.msk.msra.mxu0 %vm166_vm2, %v477_v14  ;;  %v165_v15 = vpop.permute.xlu0 %164 }
 0x18b   :  { %1765 = vmatpush3.xpose.msk.msra.mxu1 %vm166_vm2, %v165_v15  ;;  %1794 = vmatprep.subr.mxu0 %v2027_v8 }
 0x18c   :  { %1769 = vmatprep.subr.mxu1 %v2027_v8 }
 0x18d   :  { %1787 = vmatmul.mubr.msk.f32.vlgmr.msra.gmra.mrb[2].mxu0 %vm166_vm2, %v2152_v11  ;;  %v242_v16 = vpop.permute.xlu1 %241 }
 0x18e   :  { %1767 = vmatmul.mubr.msk.f32.vlgmr.msra.gmra.mrb[0].mxu1 %vm166_vm2, %v2154_v13  ;;  %v244_v17 = vpop.permute.xlu0 %243  ;;  %1796 = vmatprep.mubr.msk.f32.mxu0 %vm2028_vm1, %v2027_v8 }
 0x18f   :  { %1770 = vmatpush3.xpose.msk.msra.mxu1 %vm166_vm2, %v244_v17  ;;  %1771 = vmatprep.mubr.msk.f32.mxu1 %vm2028_vm1, %v2027_v8 }
 0x190   :  { %1774 = vmatprep.subr.mxu1 %v2027_v8 }
 0x191   :  { %v322_v18 = vpop.permute.xlu1 %321 }
 0x192   :  { %1772 = vmatmul.mubr.msk.f32.vlgmr.msra.gmra.mrb[2].mxu1 %vm166_vm2, %v242_v16  ;;  %v555_v19 = vpop.permute.xlu0 %554 }
 0x193   :  { %1775 = vmatpush3.xpose.msk.msra.mxu1 %vm166_vm2, %v322_v18  ;;  %1776 = vmatprep.mubr.msk.f32.mxu1 %vm2028_vm1, %v2027_v8 }
 0x194   :  { %1779 = vmatprep.subr.mxu1 %v2027_v8 }
 0x195   :  { %v400_v20 = vpop.permute.xlu1 %399 }
 0x196   :  { %v320_v21 = vpop.permute.xlu0 %319 }
 0x197   :  { %1777 = vmatmul.mubr.msk.f32.vlgmr.msra.gmra.mrb[4].mxu1 %vm166_vm2, %v320_v21 }
 0x198   :  { %1780 = vmatpush3.xpose.msk.msra.mxu1 %vm166_vm2, %v400_v20  ;;  %1781 = vmatprep.mubr.msk.f32.mxu1 %vm2028_vm1, %v2027_v8 }
 0x199   :  { %v553_v22 = vpop.permute.xlu1 %552  ;;  %1789 = vmatprep.subr.mxu1 %v2027_v8 }
 0x19a   :  { %v398_v23 = vpop.permute.xlu0 %397 }
 0x19b   :  { %1782 = vmatmul.mubr.msk.f32.vlgmr.msra.gmra.mrb[6].mxu1 %vm166_vm2, %v398_v23 }
 0x19c   :  { %1790 = vmatpush3.xpose.msk.msra.mxu1 %vm166_vm2, %v555_v19  ;;  %1791 = vmatprep.mubr.msk.f32.mxu1 %vm2028_vm1, %v2027_v8 }
 0x19d   :  { %v711_v24 = vpop.permute.xlu1 %710  ;;  %1799 = vmatprep.subr.mxu1 %v2027_v8 }
 0x19e   :  { %v633_v25 = vpop.permute.xlu0 %632 }
 0x19f   :  { %1792 = vmatmul.mubr.msk.f32.vlgmr.msra.gmra.mrb[8].mxu1 %vm166_vm2, %v553_v22  ;;  %1795 = vmatpush3.xpose.msk.msra.mxu0 %vm166_vm2, %v633_v25 }
 0x1a0   :  { %1800 = vmatpush3.xpose.msk.msra.mxu1 %vm166_vm2, %v711_v24  ;;  %1801 = vmatprep.mubr.msk.f32.mxu1 %vm2028_vm1, %v2027_v8 }
 0x1a1   :  { %v709_v26 = vpop.permute.xlu1 %708  ;;  %1804 = vmatprep.subr.mxu0 %v2027_v8  ;;  %1809 = vmatprep.subr.mxu1 %v2027_v8 }
 0x1a2   :  { %v631_v27 = vpop.permute.xlu0 %630 }
 0x1a3   :  { %1797 = vmatmul.mubr.msk.f32.vlgmr.msra.gmra.mrb[4].mxu0 %vm166_vm2, %v631_v27  ;;  %1802 = vmatmul.mubr.msk.f32.vlgmr.msra.gmra.mrb[10].mxu1 %vm166_vm2, %v709_v26 }
 0x1a4   :  { %1811 = vmatprep.mubr.msk.f32.mxu1 %vm2028_vm1, %v2027_v8  ;;  %1806 = vmatprep.mubr.msk.f32.mxu0 %vm2028_vm1, %v2027_v8 }
 0x260   :  { %v548_v28 = vpop.f32.mrb[2].mxu0 }
 0x261   :  { %v237_v29 = vpop.f32.mrb[0].mxu1  ;;  %v1788_v30 = vpop.f32.mrb[3].mxu0  ;;  %v798_v37 = vsel %vm166_vm2, %v548_v28, -inf }
 0x262   :  { %v1768_v31 = vpop.f32.mrb[1].mxu1  ;;  %v786_v32 = vsel %vm166_vm2, %v237_v29, -inf }
 0x263   :  { %787 = vmax.xlane.f32.xlu0 %v786_v32 }
 0x265   :  { %v315_v33 = vpop.f32.mrb[2].mxu1 }
 0x266   :  { %v1773_v34 = vpop.f32.mrb[3].mxu1  ;;  %v789_v35 = vsel %vm166_vm2, %v315_v33, -inf }
 0x267   :  { %790 = vmax.xlane.f32.xlu1 %v789_v35 }
 0x26a   :  { %v393_v36 = vpop.f32.mrb[4].mxu1 }
 0x26b   :  { %799 = vmax.xlane.f32.xlu1 %v798_v37  ;;  %v1778_v38 = vpop.f32.mrb[5].mxu1  ;;  %v792_v39 = vsel %vm166_vm2, %v393_v36, -inf }
 0x26c   :  { %793 = vmax.xlane.f32.xlu0 %v792_v39 }
 0x26e   :  { %v471_v40 = vpop.f32.mrb[6].mxu1 }
 0x26f   :  { %v1783_v41 = vpop.f32.mrb[7].mxu1  ;;  %v795_v42 = vsel %vm166_vm2, %v471_v40, -inf }
 0x270   :  { %796 = vmax.xlane.f32.xlu0 %v795_v42 }
 0x272   :  { %v626_v43 = vpop.f32.mrb[8].mxu1 }
 0x273   :  { %v1793_v44 = vpop.f32.mrb[9].mxu1  ;;  %v801_v45 = vsel %vm166_vm2, %v626_v43, -inf }
 0x274   :  { %802 = vmax.xlane.f32.xlu0 %v801_v45 }
 0x276   :  { %v704_v46 = vpop.f32.mrb[4].mxu0  ;;  %v782_v47 = vpop.f32.mrb[10].mxu1 }
 0x277   :  { %v1798_v48 = vpop.f32.mrb[5].mxu0  ;;  %v1803_v49 = vpop.f32.mrb[11].mxu1  ;;  %v807_v50 = vsel %vm166_vm2, %v782_v47, -inf  ;;  %v804_v51 = vsel %vm166_vm2, %v704_v46, -inf }
 0x278   :  { %808 = vmax.xlane.f32.xlu0 %v807_v50  ;;  %805 = vmax.xlane.f32.xlu1 %v804_v51 }
 0x289   :  { %874 = vrot.lane.b32.xlu1 %v2154_v13, %s2036_s23 }
 0x28d   :  { %1026 = vrot.lane.b32.xlu1 %v2154_v13, %s2037_s24 }
 0x28e   :  { %950 = vrot.lane.b32.xlu0 %v2154_v13, %s2038_s1 }
 0x291   :  { %1102 = vrot.lane.b32.xlu1 %v2154_v13, %s2039_s25 }
 0x292   :  { %1195 = vrot.lane.b32.xlu0 %v2152_v11, %s2036_s23 }
 0x295   :  { %1271 = vrot.lane.b32.xlu1 %v2152_v11, %s2038_s1 }
 0x2f0   :  { %v788_v52 = vpop.xlane.xlu0 %787 }
 0x2f1   :  { %v810_v55 = vsub.f32 %v237_v29, %v788_v52 }
 0x2f3   :  { %v818_v60 = vmul.f32 1.442695, %v810_v55 }
 0x2f4   :  { %v791_v53 = vpop.xlane.xlu1 %790 }
 0x2f5   :  { %v811_v54 = vsub.f32 %v315_v33, %v791_v53 }
 0x2f7   :  { %v820_v56 = vmul.f32 1.442695, %v811_v54 }
 0x2f8   :  { %v800_v57 = vpop.xlane.xlu1 %799 }
 0x2f9   :  { %1892 = vpow2.f32 %v820_v56  ;;  %v814_v58 = vsub.f32 %v548_v28, %v800_v57  ;;  %v794_v59 = vpop.xlane.xlu0 %793 }
 0x2fa   :  { %v812_v4 = vsub.f32 %v393_v36, %v794_v59 }
 0x2fb   :  { %v826_v61 = vmul.f32 1.442695, %v814_v58 }
 0x2fc   :  { %v822_v16 = vmul.f32 1.442695, %v812_v4  ;;  %v1514_v4 = vld [vmem:[#allocation7] sm:$0xff] }
 0x2fd   :  { %1894 = vpow2.f32 %v826_v61  ;;  %v797_v62 = vpop.xlane.xlu0 %796 }
 0x2fe   :  { %v813_v63 = vsub.f32 %v471_v40, %v797_v62  ;;  %1896 = vpow2.f32 %v818_v60 }
 0x300   :  { %v824_v0 = vmul.f32 1.442695, %v813_v63 }
 0x301   :  { %v803_v1 = vpop.xlane.xlu0 %802 }
 0x302   :  { %1898 = vpow2.f32 %v824_v0  ;;  %v815_v2 = vsub.f32 %v626_v43, %v803_v1 }
 0x303   :  { %v1893_v3 = vpop.eup %1892 }
 0x304   :  { %v828_v6 = vmul.f32 1.442695, %v815_v2  ;;  %v837_v9 = vsel %vm166_vm2, %v1893_v3, 0.0 }
 0x305   :  { %838 = vadd.xlane.f32.xlu0 %v837_v9  ;;  %v806_v10 = vpop.xlane.xlu1 %805  ;;  %v809_v12 = vpop.xlane.xlu0 %808 }
 0x306   :  { %1900 = vpow2.f32 %v828_v6  ;;  %v816_v13 = vsub.f32 %v704_v46, %v806_v10  ;;  %v817_v14 = vsub.f32 %v782_v47, %v809_v12  ;;  %v1515_v6 = vld [vmem:[#allocation7 + $0x8] sm:$0xff] }
 0x307   :  { %v2229_v15 = vpop.eup %1894  ;;  %v1863_v10 = vpack.c.bf16 %v1515_v6, %v1514_v4 }
 0x308   :  { %v830_v17 = vmul.f32 1.442695, %v816_v13  ;;  %v832_v18 = vmul.f32 1.442695, %v817_v14  ;;  %v846_v19 = vsel %vm166_vm2, %v2229_v15, 0.0  ;;  %v1897_v20 = vpop.eup %1896  ;;  %v1516_v13 = vld [vmem:[#allocation7 + $0x10] sm:$0xff] }
 0x309   :  { %847 = vadd.xlane.f32.xlu1 %v846_v19  ;;  %v875_v21 = vpop.permute.xlu1 %874  ;;  %v951_v22 = vpop.permute.xlu0 %950  ;;  %v834_v24 = vsel %vm166_vm2, %v1897_v20, 0.0 }
 0x30a   :  { %1902 = vpow2.f32 %v830_v17  ;;  %1805 = vmatpush3.msra.mxu0 %v875_v21  ;;  %1810 = vmatpush3.msra.mxu1 %v951_v22 }
 0x30b   :  { %1904 = vpow2.f32 %v832_v18  ;;  %1819 = vmatprep.subr.mxu1 %v2027_v8  ;;  %1814 = vmatprep.subr.mxu0 %v2027_v8 }
 0x30c   :  { %v1899_v23 = vpop.eup %1898  ;;  %1906 = vpow2.f32 %v822_v16 }
 0x30d   :  { %835 = vadd.xlane.f32.xlu1 %v834_v24  ;;  %v843_v25 = vsel %vm166_vm2, %v1899_v23, 0.0  ;;  %v1027_v34 = vpop.permute.xlu1 %1026  ;;  %v1196_v36 = vpop.permute.xlu0 %1195 }
 0x30e   :  { %844 = vadd.xlane.f32.xlu0 %v843_v25 }
 0x310   :  { %v1901_v26 = vpop.eup %1900 }
 0x311   :  { %v849_v27 = vsel %vm166_vm2, %v1901_v26, 0.0  ;;  %v1103_v35 = vpop.permute.xlu1 %1102 }
 0x312   :  { %850 = vadd.xlane.f32.xlu0 %v849_v27 }
 0x314   :  { %v2238_v28 = vpop.eup %1902 }
 0x315   :  { %v1905_v29 = vpop.eup %1904  ;;  %v852_v30 = vsel %vm166_vm2, %v2238_v28, 0.0  ;;  %v1272_v37 = vpop.permute.xlu1 %1271 }
 0x316   :  { %v1907_v31 = vpop.eup %1906  ;;  %853 = vadd.xlane.f32.xlu1 %v852_v30  ;;  %v855_v32 = vsel %vm166_vm2, %v1905_v29, 0.0 }
 0x317   :  { %856 = vadd.xlane.f32.xlu0 %v855_v32  ;;  %v840_v33 = vsel %vm166_vm2, %v1907_v31, 0.0 }
 0x31a   :  { %841 = vadd.xlane.f32.xlu1 %v840_v33 }
 0x32b   :  { %1423 = vrot.lane.b32.xlu1 %v2152_v11, %s2039_s25 }
 0x32d   :  { %1347 = vrot.lane.b32.xlu0 %v2152_v11, %s2037_s24 }
 0x392   :  { %v839_v38 = vpop.xlane.xlu0 %838 }
 0x393   :  { %1908 = vrcp.f32 %v839_v38 }
 0x396   :  { %v848_v39 = vpop.xlane.xlu1 %847 }
 0x39a   :  { %v836_v40 = vpop.xlane.xlu1 %835 }
 0x39b   :  { %1910 = vrcp.f32 %v836_v40  ;;  %v845_v41 = vpop.xlane.xlu0 %844 }
 0x39c   :  { %1912 = vrcp.f32 %v845_v41 }
 0x39d   :  { %v1909_v42 = vpop.eup %1908 }
 0x39e   :  { %v861_v43 = vmul.f32 %v1909_v42, %v1893_v3 }
 0x39f   :  { %v851_v44 = vpop.xlane.xlu0 %850 }
 0x3a0   :  { %1914 = vrcp.f32 %v851_v44  ;;  %1812 = vmatmul.mubr.msk.f32.vlgmr.msra.gmra.mrb[12].mxu1 %vm166_vm2, %v861_v43 }
 0x3a1   :  { %1820 = vmatpush3.msra.mxu1 %v1103_v35  ;;  %1821 = vmatprep.mubr.msk.f32.mxu1 %vm2028_vm1, %v2027_v8 }
 0x3a2   :  { %1829 = vmatprep.subr.mxu1 %v2027_v8 }
 0x3a3   :  { %v854_v11 = vpop.xlane.xlu1 %853 }
 0x3a4   :  { %v857_v45 = vpop.xlane.xlu0 %856 }
 0x3a5   :  { %v1911_v46 = vpop.eup %1910  ;;  %1916 = vrcp.f32 %v857_v45 }
 0x3a6   :  { %v1913_v47 = vpop.eup %1912  ;;  %v859_v48 = vmul.f32 %v1911_v46, %v1897_v20 }
 0x3a7   :  { %v865_v49 = vmul.f32 %v1913_v47, %v1899_v23  ;;  %v842_v50 = vpop.xlane.xlu1 %841 }
 0x3a8   :  { %1918 = vrcp.f32 %v842_v50  ;;  %1807 = vmatmul.mubr.msk.f32.vlgmr.msra.gmra.mrb[6].mxu0 %vm166_vm2, %v859_v48  ;;  %v1348_v61 = vpop.permute.xlu0 %1347 }
 0x3a9   :  { %1815 = vmatpush3.msra.mxu0 %v1027_v34  ;;  %1822 = vmatmul.mubr.msk.f32.vlgmr.msra.gmra.mrb[14].mxu1 %vm166_vm2, %v865_v49  ;;  %1920 = vrcp.f32 %v848_v39 }
 0x3aa   :  { %v1915_v51 = vpop.eup %1914  ;;  %1830 = vmatpush3.msra.mxu1 %v1272_v37  ;;  %1831 = vmatprep.mubr.msk.f32.mxu1 %vm2028_vm1, %v2027_v8  ;;  %1922 = vrcp.f32 %v854_v11 }
 0x3ab   :  { %v869_v52 = vmul.f32 %v1915_v51, %v1901_v26  ;;  %v1424_v53 = vpop.permute.xlu1 %1423  ;;  %1839 = vmatprep.subr.mxu1 %v2027_v8  ;;  %1816 = vmatprep.mubr.msk.f32.mxu0 %vm2028_vm1, %v2027_v8 }
 0x3ac   :  { %1824 = vmatprep.subr.mxu0 %v2027_v8 }
 0x3ad   :  { %1832 = vmatmul.mubr.msk.f32.vlgmr.msra.gmra.mrb[16].mxu1 %vm166_vm2, %v869_v52 }
 0x3ae   :  { %1840 = vmatpush3.msra.mxu1 %v1424_v53  ;;  %1841 = vmatprep.mubr.msk.f32.mxu1 %vm2028_vm1, %v2027_v8 }
 0x3af   :  { %v1917_v54 = vpop.eup %1916 }
 0x3b0   :  { %v873_v55 = vmul.f32 %v1917_v54, %v1905_v29 }
 0x3b2   :  { %v1919_v56 = vpop.eup %1918  ;;  %1842 = vmatmul.mubr.msk.f32.vlgmr.msra.gmra.mrb[18].mxu1 %vm166_vm2, %v873_v55 }
 0x3b3   :  { %v863_v57 = vmul.f32 %v1919_v56, %v1907_v31  ;;  %v1921_v58 = vpop.eup %1920 }
 0x3b4   :  { %v867_v59 = vmul.f32 %v1921_v58, %v2229_v15  ;;  %v1923_v60 = vpop.eup %1922 }
 0x3b5   :  { %1817 = vmatmul.mubr.msk.f32.vlgmr.msra.gmra.mrb[8].mxu0 %vm166_vm2, %v863_v57  ;;  %v871_v62 = vmul.f32 %v1923_v60, %v2238_v28 }
 0x3b6   :  { %1825 = vmatpush3.msra.mxu0 %v1196_v36  ;;  %1826 = vmatprep.mubr.msk.f32.mxu0 %vm2028_vm1, %v2027_v8  ;;  %v1704_v36 = vld [vmem:[%s2316_s4] ss:$0 sm:$0xff] }
 0x3b7   :  { %1834 = vmatprep.subr.mxu0 %v2027_v8 }
 0x3b9   :  { %1827 = vmatmul.mubr.msk.f32.vlgmr.msra.gmra.mrb[10].mxu0 %vm166_vm2, %v867_v59 }
 0x3ba   :  { %1835 = vmatpush3.msra.mxu0 %v1348_v61  ;;  %1836 = vmatprep.mubr.msk.f32.mxu0 %vm2028_vm1, %v2027_v8  ;;  %v1517_v8 = vld [vmem:[#allocation7 + $0x18] sm:$0xff] }
 0x3bb   :  { %1864 = vmatprep.subr.bf16.mxu0 %v1863_v10  ;;  %v1867_v15 = vpack.c.bf16 %v1517_v8, %v1516_v13 }
 0x3bd   :  { %1837 = vmatmul.mubr.msk.f32.vlgmr.msra.gmra.mrb[12].mxu0 %vm166_vm2, %v871_v62  ;;  %v1707_v62 = vld [vmem:[%s2317_s5] ss:$0 sm:$0xff]  ;;  %s1994_s5 = scalar_lea.vmem %s1665_s12, 256 }
 0x3be   :  { %1866 = vmatpush3.bf16.msra.mxu0 %v1863_v10  ;;  %p1995_p10 = scmp.ne.s32.totalorder %s1665_s12, %s1994_s5  ;;  %p2000_p12 = scmp.lt.s32.totalorder %s1994_s5, %s1994_s5 }
 0x3bf   :  { %1868 = vmatprep.subr.bf16.mxu0 %v1867_v15 }
 0x3c0   :  { %p2001_p13 = por %p2000_p12, %p1999_p11 }
 0x3c2   :  { %1870 = vmatpush3.bf16.msra.mxu0 %v1867_v15  ;;  %p2002_p0 = pnand %p2001_p13, %p1995_p10 }
 0x473   :  { %v1022_v63 = vpop.f32.mrb[12].mxu1 }
 0x474   :  { %1179 = vrot.lane.b32.xlu0 %v1022_v63, %s2025_s14  ;;  %v1813_v0 = vpop.f32.mrb[13].mxu1 }
 0x475   :  { %v1708_v0 = vld [vmem:[%s2318_s6] ss:$0 sm:$0xff] }
 0x47b   :  { %v946_v1 = vpop.f32.mrb[6].mxu0 }
 0x47c   :  { %v1808_v2 = vpop.f32.mrb[7].mxu0  ;;  %v1174_v3 = vpop.f32.mrb[14].mxu1 }
 0x47d   :  { %v1823_v9 = vpop.f32.mrb[15].mxu1 }
 0x480   :  { %v1343_v12 = vpop.f32.mrb[16].mxu1 }
 0x481   :  { %1500 = vrot.lane.b32.xlu0 %v1343_v12, %s2025_s14  ;;  %v1833_v14 = vpop.f32.mrb[17].mxu1 }
 0x485   :  { %v1495_v16 = vpop.f32.mrb[18].mxu1 }
 0x486   :  { %v1843_v17 = vpop.f32.mrb[19].mxu1 }
 0x488   :  { %v1098_v18 = vpop.f32.mrb[8].mxu0 }
 0x489   :  { %1183 = vrot.lane.b32.xlu1 %v1098_v18, %s2040_s26  ;;  %v1818_v19 = vpop.f32.mrb[9].mxu0 }
 0x48c   :  { %v1267_v20 = vpop.f32.mrb[10].mxu0 }
 0x48d   :  { %v1828_v21 = vpop.f32.mrb[11].mxu0  ;;  %1187 = vrot.lane.b32.xlu1 %v1174_v3, %s2041_s28 }
 0x490   :  { %v1419_v22 = vpop.f32.mrb[12].mxu0 }
 0x491   :  { %1508 = vrot.lane.b32.xlu1 %v1495_v16, %s2041_s28  ;;  %1504 = vrot.lane.b32.xlu0 %v1419_v22, %s2040_s26  ;;  %v1838_v23 = vpop.f32.mrb[13].mxu0 }
 0x4e6   :  { %v1180_v24 = vpop.permute.xlu0 %1179 }
 0x4e7   :  { %v1190_v26 = vsel %vm166_vm2, %v946_v1, %v1180_v24 }
 0x4f3   :  { %v1501_v27 = vpop.permute.xlu0 %1500 }
 0x4f4   :  { %v1511_v31 = vsel %vm166_vm2, %v1267_v20, %v1501_v27 }
 0x4fb   :  { %v1184_v25 = vpop.permute.xlu1 %1183 }
 0x4fc   :  { %v1192_v28 = vsel %vm1191_vm3, %v1190_v26, %v1184_v25 }
 0x4ff   :  { %v1188_v29 = vpop.permute.xlu1 %1187 }
 0x500   :  { %v1194_v30 = vsel %vm1193_vm4, %v1192_v28, %v1188_v29 }
 0x501   :  { %1852 = vmatprep.mubr.msk.f32.mxu0 %vm81_vm0, %v1194_v30 }
 0x503   :  { %v1509_v32 = vpop.permute.xlu1 %1508  ;;  %v1505_v33 = vpop.permute.xlu0 %1504 }
 0x504   :  { %v1512_v34 = vsel %vm1191_vm3, %v1511_v31, %v1505_v33 }
 0x505   :  { %v1513_v35 = vsel %vm1193_vm4, %v1512_v34, %v1509_v32 }
 0x506   :  { %1853 = vmatmul.mubr.msk.f32.vlgmr.msra.gmra.mrb[14].mxu0 %vm81_vm0, %v1513_v35 }
 0x5d9   :  { %v1854_v37 = vpop.f32.mrb[14].mxu0 }
 0x5da   :  { %v1603_v38 = vadd.f32 %v1854_v37, %v1704_v36  ;;  %v1597_v39 = vpop.f32.mrb[15].mxu0 }
 0x5db   :  { %v1598_v40 = vadd.f32 %v1704_v36, %v1597_v39 }
 0x5dc   :  { %v1607_v41 = vadd.f32 %v1603_v38, %v2139_v7 }
 0x5dd   :  { %v1606_v42 = vadd.f32 %v1598_v40, %v2135_v5 }
 0x5de   :  { %v1611_v43 = vsel %vm81_vm0, %v1607_v41, 0.0  ;;  %v1618_v46 = vmul.f32 %v1607_v41, %v1607_v41 }
 0x5df   :  { %1612 = vadd.xlane.f32.xlu1 %v1611_v43  ;;  %v1608_v44 = vsel %vm81_vm0, %v1606_v42, 0.0  ;;  %v1617_v11 = vmul.f32 %v1606_v42, %v1606_v42 }
 0x5e0   :  { %1609 = vadd.xlane.f32.xlu0 %v1608_v44  ;;  %v1622_v47 = vsel %vm81_vm0, %v1618_v46, 0.0 }
 0x5e1   :  { %v1619_v45 = vsel %vm81_vm0, %v1617_v11, 0.0 }
 0x5e4   :  { %1620 = vadd.xlane.f32.xlu0 %v1619_v45 }
 0x5e8   :  { %1623 = vadd.xlane.f32.xlu0 %v1622_v47 }
 0x66c   :  { %v1613_v50 = vpop.xlane.xlu1 %1612 }
 0x66d   :  { %v1610_v48 = vpop.xlane.xlu0 %1609  ;;  %v1616_v51 = vmul.f32 0.03125, %v1613_v50 }
 0x66e   :  { %v1615_v49 = vmul.f32 0.03125, %v1610_v48 }
 0x66f   :  { %v1628_v55 = vmul.f32 %v1616_v51, %v1616_v51  ;;  %v1632_v1 = vsub.f32 %v1607_v41, %v1616_v51 }
 0x670   :  { %v1627_v5 = vmul.f32 %v1615_v49, %v1615_v49  ;;  %v1631_v60 = vsub.f32 %v1606_v42, %v1615_v49 }
 0x671   :  { %v1621_v7 = vpop.xlane.xlu0 %1620 }
 0x672   :  { %v1625_v52 = vmul.f32 0.03125, %v1621_v7 }
 0x674   :  { %v1629_v53 = vsub.f32 %v1625_v52, %v1627_v5 }
 0x675   :  { %v1624_v54 = vpop.xlane.xlu0 %1623 }
 0x676   :  { %v1633_v56 = vadd.f32 1e-12, %v1629_v53  ;;  %v1626_v57 = vmul.f32 0.03125, %v1624_v54 }
 0x678   :  { %1924 = vrsqrt.f32 %v1633_v56  ;;  %v1630_v58 = vsub.f32 %v1626_v57, %v1628_v55 }
 0x67a   :  { %v1634_v59 = vadd.f32 1e-12, %v1630_v58 }
 0x67c   :  { %1926 = vrsqrt.f32 %v1634_v59 }
 0x682   :  { %v1925_v61 = vpop.eup %1924 }
 0x683   :  { %v1637_v63 = vmul.f32 %v1925_v61, %v1631_v60 }
 0x685   :  { %v1646_v2 = vmul.f32 %v1707_v62, %v1637_v63 }
 0x686   :  { %v1927_v3 = vpop.eup %1926 }
 0x687   :  { %v1638_v4 = vmul.f32 %v1927_v3, %v1632_v1  ;;  %v1655_v6 = vadd.f32 %v1708_v0, %v1646_v2 }
 0x689   :  { %v1647_v9 = vmul.f32 %v1707_v62, %v1638_v4  ;;  %1657 = vst.msk [vmem:[#allocation8] sm:$0xff] %vm81_vm0, %v1655_v6 }
 0x68b   :  { %v1656_v10 = vadd.f32 %v1708_v0, %v1647_v9 }
 0x68d   :  { %1658 = vst.msk [vmem:[#allocation8 + $0x8] sm:$0xff] %vm81_vm0, %v1656_v10 }
 0x68e   :  { %2005 = shalt.err (!%p2002_p0)
}
 0x68f   :  { %s2006_s0 = scalar_lea.hbm %s2319_s7, 256 }
 0x690   :  { %p2007_p1 = scmp.ne.s32.totalorder %s2319_s7, %s2006_s0  ;;  %p2010_p2 = scmp.lt.u32.totalorder %s2006_s0, %s2319_s7 }
 0x692   :  { %p2012_p3 = pnand %p2010_p2, %p2007_p1 }
 0x694   :  { %2015 = shalt.err (!%p2012_p3)
}
 0x695   :  { %1670 = dma.vmem_to_hbm [thread:$0]  %s1665_s12, 256, %s2319_s7, [#allocation4], %s2024_s13, %s2024_s13, %s2025_s14  }
 0x696   :  { %2020 = dma.done.wait [#allocation4], 256  }
 0x697   :  { %2021 = vsyncadd [#allocation4], 4294967040 }
 0x698   :  { %1674 = vsyncpa [#allocation3], 1 }
 0x699   :  { %1675 = vsyncpa [#allocation6], 1 }
 0x69a   :  { %1676 = vsyncpa [#allocation4], 1 }

</bundles_post_ra>
